<compile_context>
chip_gen: v7x
topology: tpu7x:2x2x1
jax: 0.10.0
libtpu: 0.0.40
codegen_flags: <defaults>
</compile_context>

<pallas_src>
import functools

import jax
import jax.numpy as jnp
import numpy as np
from jax.experimental import pallas as pl
from jax.experimental.pallas import tpu as pltpu


# ----------------------------- config ---------------------------------------
class Config:
    ent_dim = 32
    rel_dim = 32          # must equal ent_dim (see note above)
    gamma = 12.0
    norm_p = 2            # 1 or 2


config = Config()


# ----------------------------- helpers ---------------------------------------
def _round_up(x, m):
    return ((x + m - 1) // m) * m


def _vmem_budget():
    """(double-buffered block budget, scoped vmem limit) in bytes, per chip gen."""
    cap = 64 * 1024 * 1024                         # conservative default (v7x physical)
    try:
        cap = int(getattr(pltpu.get_tpu_info(), "vmem_capacity_bytes", cap))
    except Exception:
        pass
    block_budget = min(cap // 3, 24 * 1024 * 1024)                     # v7x-safe
    vmem_limit = max(32 * 1024 * 1024, min(cap // 2, 64 * 1024 * 1024))
    return block_budget, vmem_limit


def _choose_tb(B, n_cand, dr, de, block_budget):
    """Largest batch tile whose double-buffered, tile-padded blocks fit VMEM."""
    # per-batch-row VMEM bytes with (16,128) bf16 / (8,128) f32 lane padding,
    # times 2 pipeline buffers per stream.
    m_row = _round_up(dr * de, 128) * 2                  # bf16 M slab
    c_row = _round_up(n_cand * de, 128) * 2              # bf16 candidate slab
    r_row = _round_up(dr, 128) * 4                       # f32 sign*r
    o_row = _round_up(n_cand, 8) * 4 + 512               # f32 scores (+ slack)
    per_row = 2 * (m_row + c_row + r_row + o_row)
    tb = max(1, block_budget // per_row)
    tb = min(tb, 512)                                    # bound per-step matmul unroll
    # keep >= ~8 grid blocks so both v7x TensorCores get work and the software
    # pipeline has enough steps to overlap DMA with compute.
    tb = min(tb, max(128, _round_up(max(B // 8, 1), 128)))
    if tb >= B:
        return B                                         # single (full-extent) block
    return max(128, (tb // 128) * 128)                   # lane-dense output blocks


# ----------------------------- Pallas kernel --------------------------------
def _transr_kernel(m_ref, c_ref, r_ref, o_ref, *, norm_p, gamma, n_cand, dr, de,
                   transpose_out):
    # m_ref : (TB, Dr*De) bf16   lane-dense projection matrices
    # c_ref : (TB, Nc*De) bf16   candidates with the positive entity pre-subtracted
    # r_ref : (TB, Dr)    f32    sign * r
    # o_ref : (Nc, TB) f32 if transpose_out else (TB, 1) f32
    tb = m_ref.shape[0]
    m = m_ref[...].reshape(tb, dr, de)                   # (TB, Dr, De)

    if n_cand == 1:
        # pos-only: one (Dr,De)·(De,) matvec per sample, done on the VPU.
        c1 = c_ref[...].astype(jnp.float32)                              # (TB, De)
        y = jnp.sum(m.astype(jnp.float32) * c1[:, None, :], axis=-1)     # (TB, Dr)
        y = y + r_ref[...]
        if norm_p == 1:
            s = jnp.sum(jnp.abs(y), axis=-1, keepdims=True)
        else:
            s = jnp.sqrt(jnp.sum(y * y, axis=-1, keepdims=True))
        o_ref[...] = s - gamma                                           # (TB, 1)
        return

    c = c_ref[...].reshape(tb, n_cand, de)               # (TB, Nc, De)
    # y[b, n, r] = sum_d c[b, n, d] * m[b, r, d]   (f32 accumulation on the MXU)
    y = jnp.einsum("bnd,brd->bnr", c, m, preferred_element_type=jnp.float32)
    y = y + r_ref[...][:, None, :]                       # + sign*r on the VPU
    if norm_p == 1:
        s = jnp.sum(jnp.abs(y), axis=-1)                 # (TB, Nc)
    else:
        s = jnp.sqrt(jnp.sum(y * y, axis=-1))            # (TB, Nc)
    s = s - gamma
    if transpose_out:
        o_ref[...] = s.T                                 # (Nc, TB): lane-dense store
    else:
        o_ref[...] = s


def _transr_pallas(m_flat, c_flat, rvec, *, n_cand, dr, de, norm_p, gamma):
    B = m_flat.shape[0]
    block_budget, vmem_limit = _vmem_budget()
    tb = _choose_tb(B, n_cand, dr, de, block_budget)
    n_blk = pl.cdiv(B, tb)                               # no jnp.pad: masked last block
    transpose_out = n_cand > 1

    kernel = functools.partial(
        _transr_kernel, norm_p=int(norm_p), gamma=float(gamma),
        n_cand=int(n_cand), dr=int(dr), de=int(de), transpose_out=transpose_out)

    if transpose_out:
        out_shape = jax.ShapeDtypeStruct((n_cand, B), jnp.float32)
        out_spec = pl.BlockSpec((n_cand, tb), lambda i: (0, i))
    else:
        out_shape = jax.ShapeDtypeStruct((B, 1), jnp.float32)
        out_spec = pl.BlockSpec((tb, 1), lambda i: (i, 0))

    cost = pl.CostEstimate(
        flops=2 * B * n_cand * dr * de,
        transcendentals=0,
        bytes_accessed=int(m_flat.size * 2 + c_flat.size * 2 + rvec.size * 4
                           + B * n_cand * 4))

    out = pl.pallas_call(
        kernel,
        out_shape=out_shape,
        grid_spec=pltpu.PrefetchScalarGridSpec(
            num_scalar_prefetch=0,
            grid=(n_blk,),
            in_specs=[
                pl.BlockSpec((tb, dr * de), lambda i: (i, 0)),
                pl.BlockSpec((tb, n_cand * de), lambda i: (i, 0)),
                pl.BlockSpec((tb, dr), lambda i: (i, 0)),
            ],
            out_specs=out_spec,
        ),
        compiler_params=pltpu.CompilerParams(
            dimension_semantics=("parallel",),
            vmem_limit_bytes=int(vmem_limit)),
        cost_estimate=cost,
    )(m_flat, c_flat, rvec)

    return out.T if transpose_out else out               # (B, Nc) / (B, 1)


# ----------------------------- glue (plain JAX) ------------------------------
def _max_norm_renorm(w, ids, max_norm=1.0):
    # Mimics nn.Embedding(max_norm=1.0) lookup-time renorm (p=2).
    rows = w[ids]
    nrm = jnp.linalg.norm(rows, axis=-1, keepdims=True)
    scale = jnp.where(nrm > max_norm, max_norm / nrm, 1.0)
    return rows * scale


def transr_forward(params, pos_sample, neg_sample=None, mode=None):
    ent_w, rel_w, mr_w, gamma = params
    B = pos_sample.shape[0]
    De, Dr = config.ent_dim, config.rel_dim
    assert De == Dr, "TransR (as written) requires rel_dim == ent_dim"

    h = _max_norm_renorm(ent_w, pos_sample[:, 0])          # (B, De)
    r = _max_norm_renorm(rel_w, pos_sample[:, 1])          # (B, De)
    t = _max_norm_renorm(ent_w, pos_sample[:, 2])          # (B, De)
    m_flat = mr_w[pos_sample[:, 1]]                        # (B, Dr*De) lane-dense slab

    if neg_sample is not None:
        neg = _max_norm_renorm(ent_w, neg_sample)          # (B, Nc, De)
        if mode == "head-batch":
            cand, rvec = neg - t[:, None, :], r            # ||M(neg-t)+r||
        elif mode == "tail-batch":
            cand, rvec = neg - h[:, None, :], -r           # ||M(neg-h)-r|| == ||Mh+r-Mneg||
        else:
            raise ValueError("mode %s not supported" % mode)
    else:
        cand, rvec = (h - t)[:, None, :], r                # ||M(h-t)+r||

    n_cand = cand.shape[1]
    c_flat = cand.reshape(B, n_cand * De)                  # natural gather layout, flat

    return _transr_pallas(
        m_flat.astype(jnp.bfloat16), c_flat.astype(jnp.bfloat16),
        rvec.astype(jnp.float32),
        n_cand=n_cand, dr=Dr, de=De,
        norm_p=config.norm_p, gamma=float(gamma))


# ----------------------------- reference (pure JAX, f32) ---------------------
def transr_reference(params, pos_sample, neg_sample=None, mode=None):
    ent_w, rel_w, mr_w, gamma = params
    B = pos_sample.shape[0]
    De, Dr = config.ent_dim, config.rel_dim
    h = _max_norm_renorm(ent_w, pos_sample[:, 0])[:, None, :]
    r = _max_norm_renorm(rel_w, pos_sample[:, 1])[:, None, :]
    t = _max_norm_renorm(ent_w, pos_sample[:, 2])[:, None, :]
    m = mr_w[pos_sample[:, 1]].reshape(B, 1, Dr, De)
    if neg_sample is not None:
        neg = _max_norm_renorm(ent_w, neg_sample)
        mr_neg = jnp.squeeze(jnp.matmul(m, neg[..., None]), -1)
        if mode == "head-batch":
            mr_t = jnp.squeeze(jnp.matmul(m, t[..., None]), -1)
            score = mr_neg + (r - mr_t)
        else:
            mr_h = jnp.squeeze(jnp.matmul(m, h[..., None]), -1)
            score = mr_h + r - mr_neg
    else:
        mr_h = jnp.squeeze(jnp.matmul(m, h[..., None]), -1)
        mr_t = jnp.squeeze(jnp.matmul(m, t[..., None]), -1)
        score = mr_h + r - mr_t
    nrm = (jnp.sum(jnp.abs(score), -1) if config.norm_p == 1
           else jnp.sqrt(jnp.sum(score * score, -1)))
    return nrm - gamma


# ----------------------------- params init -----------------------------------
def init_params(key, ent_num, rel_num):
    k1, k2, k3 = jax.random.split(key, 3)

    def xavier_uniform(k, shape):
        fan_in, fan_out = shape[1], shape[0]
        bound = float(np.sqrt(6.0 / (fan_in + fan_out)))
        return jax.random.uniform(k, shape, jnp.float32, -bound, bound)

    ent_w = xavier_uniform(k1, (ent_num, config.ent_dim))
    rel_w = xavier_uniform(k2, (rel_num, config.ent_dim))   # TransR: rel dim = ent_dim
    mr_w = xavier_uniform(k3, (rel_num, config.ent_dim * config.rel_dim))
    return ent_w, rel_w, mr_w, jnp.float32(config.gamma)


# ----------------------------- main ------------------------------------------
if __name__ == "__main__":
    ent_num, rel_num = 10, 5
    B, N_neg = 2, 8

    key = jax.random.PRNGKey(0)
    kp, kn, kw = jax.random.split(key, 3)
    params = init_params(kw, ent_num, rel_num)

    pos_sample = jnp.stack([
        jax.random.randint(kp, (B,), 0, ent_num),
        jax.random.randint(jax.random.fold_in(kp, 1), (B,), 0, rel_num),
        jax.random.randint(jax.random.fold_in(kp, 2), (B,), 0, ent_num),
    ], axis=1).astype(jnp.int32)                               # (B, 3)
    neg_sample = jax.random.randint(kn, (B, N_neg), 0, ent_num).astype(jnp.int32)

    # pos-only
    s_pos = jax.block_until_ready(transr_forward(params, pos_sample))
    # head-batch / tail-batch
    s_head = jax.block_until_ready(
        transr_forward(params, pos_sample, neg_sample, mode="head-batch"))
    s_tail = jax.block_until_ready(
        transr_forward(params, pos_sample, neg_sample, mode="tail-batch"))

    # correctness check against pure-JAX f32 reference (bf16 inputs -> looser tol)
    np.testing.assert_allclose(
        np.asarray(s_pos), np.asarray(transr_reference(params, pos_sample)),
        rtol=2e-2, atol=2e-2)
    np.testing.assert_allclose(
        np.asarray(s_head),
        np.asarray(transr_reference(params, pos_sample, neg_sample, "head-batch")),
        rtol=2e-2, atol=2e-2)
    np.testing.assert_allclose(
        np.asarray(s_tail),
        np.asarray(transr_reference(params, pos_sample, neg_sample, "tail-batch")),
        rtol=2e-2, atol=2e-2)

    assert s_pos.shape == (B, 1) and s_head.shape == (B, N_neg) and s_tail.shape == (B, N_neg)
    print("KERNEL_OK")
</pallas_src>

<mosaic_0001>
module attributes {stable_mosaic.version = 11 : i64} {
  func.func @_transr_kernel(%arg0: i32, %arg1: memref<2x1024xbf16, #tpu.memory_space<vmem>>, %arg2: memref<2x32xbf16, #tpu.memory_space<vmem>>, %arg3: memref<2x32xf32, #tpu.memory_space<vmem>>, %arg4: memref<2x1xf32, #tpu.memory_space<vmem>>) attributes {dimension_semantics = [#tpu.dimension_semantics<parallel>], iteration_bounds = array<i64: 1>, scalar_prefetch = 0 : i64, scratch_operands = 0 : i64, tpu.core_type = #tpu.core_type<tc>, window_params = [{transform_indices = @transform_0, window_bounds = array<i64: 2, 1024>}, {transform_indices = @transform_1, window_bounds = array<i64: 2, 32>}, {transform_indices = @transform_2, window_bounds = array<i64: 2, 32>}, {transform_indices = @transform_3, window_bounds = array<i64: 2, 1>}]} {
    %c0 = arith.constant 0 : index
    %c0_0 = arith.constant 0 : index
    %0 = vector.load %arg1[%c0, %c0_0] : memref<2x1024xbf16, #tpu.memory_space<vmem>>, vector<2x1024xbf16>
    %1 = vector.shape_cast %0 : vector<2x1024xbf16> to vector<2x32x32xbf16>
    %c0_1 = arith.constant 0 : index
    %c0_2 = arith.constant 0 : index
    %2 = vector.load %arg2[%c0_1, %c0_2] : memref<2x32xbf16, #tpu.memory_space<vmem>>, vector<2x32xbf16>
    %3 = arith.extf %2 : vector<2x32xbf16> to vector<2x32xf32>
    %4 = arith.extf %1 : vector<2x32x32xbf16> to vector<2x32x32xf32>
    %5 = vector.shape_cast %3 : vector<2x32xf32> to vector<2x1x32xf32>
    %6 = vector.broadcast %5 : vector<2x1x32xf32> to vector<2x32x32xf32>
    %7 = arith.mulf %4, %6 : vector<2x32x32xf32>
    %cst = arith.constant dense<0.000000e+00> : vector<2x32xf32>
    %8 = vector.multi_reduction <add>, %7, %cst [2] : vector<2x32x32xf32> to vector<2x32xf32>
    %c0_3 = arith.constant 0 : index
    %c0_4 = arith.constant 0 : index
    %9 = vector.load %arg3[%c0_3, %c0_4] : memref<2x32xf32, #tpu.memory_space<vmem>>, vector<2x32xf32>
    %10 = arith.addf %8, %9 : vector<2x32xf32>
    %11 = arith.mulf %10, %10 : vector<2x32xf32>
    %cst_5 = arith.constant dense<0.000000e+00> : vector<2xf32>
    %12 = vector.multi_reduction <add>, %11, %cst_5 [1] : vector<2x32xf32> to vector<2xf32>
    %13 = vector.shape_cast %12 : vector<2xf32> to vector<2x1xf32>
    %14 = math.sqrt %13 : vector<2x1xf32>
    %cst_6 = arith.constant 1.200000e+01 : f32
    %15 = vector.broadcast %cst_6 : f32 to vector<2x1xf32>
    %16 = arith.subf %14, %15 : vector<2x1xf32>
    %c0_7 = arith.constant 0 : index
    %c0_8 = arith.constant 0 : index
    %17 = vector.load %arg4[%c0_7, %c0_8] : memref<2x1xf32, #tpu.memory_space<vmem>>, vector<2x1xf32>
    tpu.vector_store %arg4[%c0_7, %c0_8], %16 {strides = array<i32>} : memref<2x1xf32, #tpu.memory_space<vmem>>, vector<2x1xf32>,
    return
  }
  func.func @transform_0(%arg0: i32) -> (i32, i32) {
    %c0_i32 = arith.constant 0 : i32
    %c0_i32_0 = arith.constant 0 : i32
    return %arg0, %c0_i32 : i32, i32
  }
  func.func @transform_1(%arg0: i32) -> (i32, i32) {
    %c0_i32 = arith.constant 0 : i32
    %c0_i32_0 = arith.constant 0 : i32
    return %arg0, %c0_i32 : i32, i32
  }
  func.func @transform_2(%arg0: i32) -> (i32, i32) {
    %c0_i32 = arith.constant 0 : i32
    %c0_i32_0 = arith.constant 0 : i32
    return %arg0, %c0_i32 : i32, i32
  }
  func.func @transform_3(%arg0: i32) -> (i32, i32) {
    %c0_i32 = arith.constant 0 : i32
    %c0_i32_0 = arith.constant 0 : i32
    return %arg0, %c0_i32 : i32, i32
  }
}

</mosaic_0001>

<bundles_post_ra>
// kernel: tpu_custom_call.1
= control target key start
LH: loop header
LB: loop body
LE: loop exit
PB: predicated region body
PF: predicated region fallthrough
CT: control target
= control target key end

     0   :  { %8 = vsyncpa [#allocation3], 0  ;;  %s716_s12 = smov [#allocation2]   ;;  %s1024_s0 = inlined_call_operand.hbm [shape: bf16[2,1024], index: 0, kind: input, shape index: {}]   ;;  %s1025_s1 = inlined_call_operand.vmem [shape: bf16[2,32], index: 1, kind: input, shape index: {}]   ;;  %s1026_s2 = inlined_call_operand.vmem [shape: f32[2,32], index: 2, kind: input, shape index: {}]   ;;  %s1027_s3 = inlined_call_operand.vmem [shape: f32[2,1], index: 3, kind: output, shape index: {}]  }
   0x1   :  { %s15_s13 = sshll.u32 %s716_s12, 4  ;;  %s692_s16 = scalar_lea.hbm %s1024_s0, 128  ;;  %s16_s13 = int_to_ptr.vmem [resolvable:$true] %s15_s13 }
   0x2   :  { %p693_p0 = scmp.ne.s32.totalorder %s1024_s0, %s692_s16  ;;  %p696_p1 = scmp.lt.u32.totalorder %s692_s16, %s1024_s0 }
   0x4   :  { %p698_p2 = pnand %p696_p1, %p693_p0 }
   0x6   :  { %701 = shalt.err (!%p698_p2)
}
   0x7   :  { %s702_s21 = scalar_lea.vmem %s16_s13, 128  ;;  %p707_p4 = scmp.lt.s32.totalorder %s16_s13, %s16_s13 }
   0x8   :  { %p703_p3 = scmp.ne.s32.totalorder %s16_s13, %s702_s21  ;;  %p708_p5 = scmp.lt.s32.totalorder %s702_s21, %s702_s21 }
   0xa   :  { %p709_p6 = por %p708_p5, %p707_p4 }
   0xc   :  { %p710_p7 = pnand %p709_p6, %p703_p3 }
   0xe   :  { %713 = shalt.err (!%p710_p7)
}
   0xf   :  { %18 = dma.hbm_to_vmem [thread:$0]  %s1024_s0, 128, %s16_s13, [#allocation3]  }
  0x10   :  { %714 = dma.done.wait [#allocation3], 128  }
  0x11   :  { %715 = vsyncadd [#allocation3], 4294967168  ;;  %v1028_v0 = vlaneseq  ;;  %v759_v3 = vld [vmem:[#allocation2] sm:$0xff]  ;;  %s717_s26 = smov 96   ;;  %s718_s27 = smov 32   ;;  %vm491_vm0 = vcmask 261120  }
  0x12   :  { %v516_v4 = vld [vmem:[%s1026_s2] sm:$0x3]  ;;  %29 = vrot.lane.b32.xlu0 %v759_v3, %s717_s26  ;;  %35 = vrot.lane.b32.xlu1 %v759_v3, %s718_s27  ;;  %s719_s0 = smov 64   ;;  %v720_v8 = vmov 1966171168   ;;  %v38_v24 = vrot.slane %v759_v3, 2 }
  0x13   :  { %v756_v1 = vshrl.u32 %v1028_v0, 7  ;;  %v226_v9 = vunpack.c.l.s4 %v720_v8  ;;  %v190_v11 = vld [vmem:[%s1025_s1] sm:$0x1]  ;;  %v721_v15 = vmov 1983009808   ;;  %v42_v25 = vrot.slane %v759_v3, 3 }
  0x14   :  { %v191_v12 = vunpack.c.l.bf16 %v190_v11  ;;  %v243_v16 = vunpack.c.l.s4 %v721_v15  ;;  %v28_v26 = vrot.slane %v759_v3, 1  ;;  %v46_v27 = vrot.slane %v759_v3, 4 }
  0x15   :  { %v235_v2 = vsub.s32 0, %v756_v1  ;;  %v539_v6 = vsub.s32 1, %v756_v1  ;;  %v227_v10 = vunpack.c.0.s8 %v226_v9  ;;  %v50_v28 = vrot.slane %v759_v3, 5 }
  0x16   :  { %32 = vrot.lane.b32.xlu0 %v759_v3, %s719_s0  ;;  %v244_v19 = vunpack.c.0.s8 %v243_v16  ;;  %v54_v31 = vrot.slane %v759_v3, 6  ;;  %v58_v32 = vrot.slane %v759_v3, 7  ;;  %v812_v37 = vshrl.u32 %v38_v24, 16 }
  0x17   :  { %v766_v5 = vrot.slane %v516_v4, %v235_v2  ;;  %v771_v7 = vrot.slane %v516_v4, %v539_v6  ;;  %v230_v13 = vsub.s32 %v227_v10, %v756_v1  ;;  %v814_v38 = vshrl.u32 %v42_v25, 16 }
  0x18   :  { %v783_v22 = vsub.s32 %v244_v19, %v756_v1  ;;  %v824_v41 = vshrl.u32 %v46_v27, 16  ;;  %v826_v42 = vshrl.u32 %v50_v28, 16  ;;  %v66_v45 = vshrl.u32 %v759_v3, 16 }
  0x19   :  { %527 = vbcast.lane.b32.xlu1 %v766_v5, 264  ;;  %v231_v14 = vrot.slane %v191_v12, %v230_v13  ;;  %v833_v46 = vshrl.u32 %v28_v26, 16  ;;  %v837_v47 = vshrl.u32 %v54_v31, 16  ;;  %v841_v48 = vshrl.u32 %v58_v32, 16 }
  0x1a   :  { %523 = vbcast.lane.b32.xlu0 %v766_v5, 256  ;;  %vm623_vm1 = vcmask 130112   ;;  %vm630_vm2 = vcmask 195712   ;;  %vm637_vm3 = vcmask 261312   ;;  %vm658_vm4 = vcmask 1041409  }
  0x1b   :  { %v232_v17 = vcombine.high %v231_v14, %v231_v14  ;;  %v236_v18 = vrot.slane %v231_v14, %v235_v2  ;;  %vm661_vm5 = vcmask 254976   ;;  %vm673_vm8 = vcmask 1024  }
  0x1d   :  { %542 = vbcast.lane.b32.xlu1 %v771_v7, 256  ;;  %v240_v20 = vrot.slane %v232_v17, %v235_v2  ;;  %v241_v21 = vcombine.high %v236_v18, %v236_v18  ;;  %v791_v29 = vrot.slane %v236_v18, %v783_v22 }
  0x1e   :  { %546 = vbcast.lane.b32.xlu0 %v771_v7, 264 }
  0x1f   :  { %v258_v23 = vcombine.high %v240_v20, %v240_v20  ;;  %v794_v30 = vrot.slane %v241_v21, %v783_v22  ;;  %v799_v33 = vrot.slane %v240_v20, %v783_v22  ;;  %v806_v35 = vcombine.high %v791_v29, %v791_v29 }
  0x21   :  { %531 = vbcast.lane.b32.xlu1 %v766_v5, 272  ;;  %v802_v34 = vrot.slane %v258_v23, %v783_v22  ;;  %v810_v36 = vcombine.high %v794_v30, %v794_v30  ;;  %v818_v39 = vcombine.high %v799_v33, %v799_v33 }
  0x22   :  { %550 = vbcast.lane.b32.xlu0 %v771_v7, 272 }
  0x23   :  { %v822_v40 = vcombine.high %v802_v34, %v802_v34 }
  0x84   :  { %v828_v43 = vpop.permute.xlu0 %29  ;;  %v830_v44 = vpop.permute.xlu1 %35 }
  0x85   :  { %v39_v49 = vrot.slane %v828_v43, 2  ;;  %v41_v50 = vrot.slane %v830_v44, 2  ;;  %v43_v51 = vrot.slane %v828_v43, 3  ;;  %v45_v52 = vrot.slane %v830_v44, 3 }
  0x86   :  { %v1031_v53 = vrot.slane %v828_v43, 1  ;;  %v1029_v54 = vrot.slane %v830_v44, 1  ;;  %v64_v55 = vpack.i.b16 %v828_v43, %v759_v3  ;;  %v47_v56 = vrot.slane %v828_v43, 4 }
  0x87   :  { %v96_v57 = vpack.i.b16 %v39_v49, %v38_v24  ;;  %v112_v58 = vpack.i.b16 %v43_v51, %v42_v25  ;;  %v49_v59 = vrot.slane %v830_v44, 4  ;;  %v51_v60 = vrot.slane %v828_v43, 5 }
  0x88   :  { %v856_v61 = vpop.permute.xlu0 %32  ;;  %v80_v62 = vpack.i.b16 %v1031_v53, %v28_v26  ;;  %v192_v63 = vunpack.c.l.bf16 %v64_v55  ;;  %v53_v2 = vrot.slane %v830_v44, 5  ;;  %v128_v4 = vpack.i.b16 %v47_v56, %v46_v27 }
  0x89   :  { %v40_v6 = vrot.slane %v856_v61, 2  ;;  %v44_v8 = vrot.slane %v856_v61, 3  ;;  %v196_v9 = vunpack.c.l.bf16 %v96_v57  ;;  %v198_v10 = vunpack.c.l.bf16 %v112_v58 }
  0x8a   :  { %v1030_v11 = vrot.slane %v856_v61, 1  ;;  %v72_v12 = vpack.i.b16 %v830_v44, %v856_v61  ;;  %v194_v13 = vunpack.c.l.bf16 %v80_v62  ;;  %v283_v14 = vmul.f32 %v791_v29, %v192_v63 }
  0x8b   :  { %v104_v15 = vpack.i.b16 %v41_v50, %v40_v6  ;;  %v120_v16 = vpack.i.b16 %v45_v52, %v44_v8  ;;  %v287_v17 = vmul.f32 %v791_v29, %v196_v9  ;;  %v289_v18 = vmul.f32 %v794_v30, %v198_v10 }
  0x8c   :  { %v88_v19 = vpack.i.b16 %v1029_v54, %v1030_v11  ;;  %v193_v20 = vunpack.c.l.bf16 %v72_v12  ;;  %v285_v21 = vmul.f32 %v794_v30, %v194_v13  ;;  %v48_v23 = vrot.slane %v856_v61, 4 }
  0x8d   :  { %v197_v24 = vunpack.c.l.bf16 %v104_v15  ;;  %v199_v25 = vunpack.c.l.bf16 %v120_v16  ;;  %v52_v26 = vrot.slane %v856_v61, 5  ;;  %v144_v27 = vpack.i.b16 %v51_v60, %v50_v28 }
  0x8e   :  { %v195_v55 = vunpack.c.l.bf16 %v88_v19  ;;  %v284_v57 = vmul.f32 %v806_v35, %v193_v20  ;;  %v136_v58 = vpack.i.b16 %v49_v59, %v48_v23  ;;  %v200_v62 = vunpack.c.l.bf16 %v128_v4 }
  0x8f   :  { %v288_v63 = vmul.f32 %v806_v35, %v197_v24  ;;  %v290_v9 = vmul.f32 %v810_v36, %v199_v25  ;;  %v152_v10 = vpack.i.b16 %v53_v2, %v52_v26  ;;  %v202_v12 = vunpack.c.l.bf16 %v144_v27 }
  0x90   :  { %v286_v28 = vmul.f32 %v810_v36, %v195_v55  ;;  %v347_v13 = vcombine.low %v283_v14, %v284_v57  ;;  %v201_v15 = vunpack.c.l.bf16 %v136_v58  ;;  %v291_v16 = vmul.f32 %v791_v29, %v200_v62 }
  0x91   :  { %v364_v19 = vcombine.low %v287_v17, %v288_v63  ;;  %v365_v20 = vcombine.low %v289_v18, %v290_v9  ;;  %v203_v0 = vunpack.c.l.bf16 %v152_v10  ;;  %v293_v4 = vmul.f32 %v794_v30, %v202_v12 }
  0x92   :  { %v348_v24 = vcombine.low %v285_v21, %v286_v28  ;;  %v355_v25 = vrot.slane %v347_v13, %v783_v22  ;;  %v292_v54 = vmul.f32 %v806_v35, %v201_v15  ;;  %v99_v11 = vshrl.u32 %v39_v49, 16 }
  0x93   :  { %v372_v53 = vrot.slane %v364_v19, %v783_v22  ;;  %v379_v27 = vrot.slane %v365_v20, %v783_v22  ;;  %v294_v14 = vmul.f32 %v810_v36, %v203_v0  ;;  %v106_v55 = vshrl.u32 %v40_v6, 16 }
  0x94   :  { %v362_v57 = vrot.slane %v348_v24, %v783_v22  ;;  %v381_v17 = vcombine.low %v291_v16, %v292_v54  ;;  %v100_v18 = vpack.i.b16 %v99_v11, %v812_v37  ;;  %v107_v21 = vshrl.u32 %v41_v50, 16 }
  0x95   :  { %v380_v58 = vcombine.low %v372_v53, %v379_v27  ;;  %v382_v62 = vcombine.low %v293_v4, %v294_v14  ;;  %v115_v49 = vshrl.u32 %v43_v51, 16  ;;  %v122_v63 = vshrl.u32 %v44_v8, 16 }
  0x96   :  { %v363_v9 = vcombine.low %v355_v25, %v362_v57  ;;  %v389_v10 = vrot.slane %v381_v17, %v783_v22  ;;  %v108_v12 = vpack.i.b16 %v107_v21, %v106_v55  ;;  %v123_v0 = vshrl.u32 %v45_v52, 16 }
  0x97   :  { %v495_v54 = vsel %vm491_vm0, %v380_v58, 0.0  ;;  %v396_v37 = vrot.slane %v382_v62, %v783_v22  ;;  %v116_v6 = vpack.i.b16 %v115_v49, %v814_v38  ;;  %v212_v50 = vunpack.c.l.bf16 %v100_v18 }
  0x98   :  { %496 = vadd.xlane.f32.xlu0 %v495_v54  ;;  %v492_v53 = vsel %vm491_vm0, %v363_v9, 0.0  ;;  %v124_v11 = vpack.i.b16 %v123_v0, %v122_v63  ;;  %v213_v51 = vunpack.c.l.bf16 %v108_v12  ;;  %v55_v8 = vrot.slane %v828_v43, 6 }
  0x99   :  { %493 = vadd.xlane.f32.xlu1 %v492_v53  ;;  %v397_v28 = vcombine.low %v389_v10, %v396_v37  ;;  %v214_v13 = vunpack.c.l.bf16 %v116_v6  ;;  %v303_v15 = vmul.f32 %v799_v33, %v212_v50  ;;  %v56_v52 = vrot.slane %v856_v61, 6 }
  0x9a   :  { %v215_v16 = vunpack.c.l.bf16 %v124_v11  ;;  %v304_v19 = vmul.f32 %v818_v39, %v213_v51  ;;  %v57_v38 = vrot.slane %v830_v44, 6  ;;  %v59_v20 = vrot.slane %v828_v43, 7 }
  0x9b   :  { %v498_v4 = vsel %vm491_vm0, %v397_v28, 0.0  ;;  %v305_v24 = vmul.f32 %v802_v34, %v214_v13  ;;  %v60_v25 = vrot.slane %v856_v61, 7  ;;  %v61_v27 = vrot.slane %v830_v44, 7 }
  0x9c   :  { %499 = vadd.xlane.f32.xlu0 %v498_v4  ;;  %v306_v14 = vmul.f32 %v822_v40, %v215_v16  ;;  %v432_v55 = vcombine.low %v303_v15, %v304_v19  ;;  %v160_v57 = vpack.i.b16 %v55_v8, %v54_v31  ;;  %v168_v17 = vpack.i.b16 %v57_v38, %v56_v52 }
  0x9d   :  { %v176_v18 = vpack.i.b16 %v59_v20, %v58_v32  ;;  %v184_v21 = vpack.i.b16 %v61_v27, %v60_v25  ;;  %v131_v58 = vshrl.u32 %v47_v56, 16  ;;  %v138_v31 = vshrl.u32 %v48_v23, 16 }
  0x9e   :  { %v433_v62 = vcombine.low %v305_v24, %v306_v14  ;;  %v440_v49 = vrot.slane %v432_v55, %v783_v22  ;;  %v204_v63 = vunpack.c.l.bf16 %v160_v57  ;;  %v205_v9 = vunpack.c.l.bf16 %v168_v17 }
  0x9f   :  { %v206_v10 = vunpack.c.l.bf16 %v176_v18  ;;  %v207_v12 = vunpack.c.l.bf16 %v184_v21  ;;  %v132_v32 = vpack.i.b16 %v131_v58, %v824_v41  ;;  %v139_v0 = vshrl.u32 %v49_v59, 16 }
  0xa0   :  { %v447_v54 = vrot.slane %v433_v62, %v783_v22  ;;  %v295_v37 = vmul.f32 %v791_v29, %v204_v63  ;;  %v296_v56 = vmul.f32 %v806_v35, %v205_v9  ;;  %v147_v23 = vshrl.u32 %v51_v60, 16 }
  0xa1   :  { %v297_v6 = vmul.f32 %v794_v30, %v206_v10  ;;  %v298_v50 = vmul.f32 %v810_v36, %v207_v12  ;;  %v140_v53 = vpack.i.b16 %v139_v0, %v138_v31  ;;  %v154_v41 = vshrl.u32 %v52_v26, 16 }
  0xa2   :  { %v448_v11 = vcombine.low %v440_v49, %v447_v54  ;;  %v398_v51 = vcombine.low %v295_v37, %v296_v56  ;;  %v148_v59 = vpack.i.b16 %v147_v23, %v826_v42  ;;  %v155_v29 = vshrl.u32 %v53_v2, 16 }
  0xa3   :  { %v399_v28 = vcombine.low %v297_v6, %v298_v50  ;;  %v216_v35 = vunpack.c.l.bf16 %v132_v32  ;;  %v217_v13 = vunpack.c.l.bf16 %v140_v53  ;;  %v67_v60 = vshrl.u32 %v828_v43, 16 }
  0xa4   :  { %v507_v30 = vsel %vm491_vm0, %v448_v11, 0.0  ;;  %v406_v36 = vrot.slane %v398_v51, %v783_v22  ;;  %v156_v15 = vpack.i.b16 %v155_v29, %v154_v41  ;;  %v218_v16 = vunpack.c.l.bf16 %v148_v59 }
  0xa5   :  { %508 = vadd.xlane.f32.xlu1 %v507_v30  ;;  %v413_v26 = vrot.slane %v399_v28, %v783_v22  ;;  %v307_v19 = vmul.f32 %v799_v33, %v216_v35  ;;  %v308_v42 = vmul.f32 %v818_v39, %v217_v13  ;;  %v68_v2 = vpack.i.b16 %v67_v60, %v66_v45 }
  0xa6   :  { %v219_v4 = vunpack.c.l.bf16 %v156_v15  ;;  %v309_v24 = vmul.f32 %v802_v34, %v218_v16  ;;  %v74_v14 = vshrl.u32 %v856_v61, 16  ;;  %v75_v55 = vshrl.u32 %v830_v44, 16 }
  0xa7   :  { %v414_v57 = vcombine.low %v406_v36, %v413_v26  ;;  %v449_v17 = vcombine.low %v307_v19, %v308_v42  ;;  %v1032_v18 = vrot.slane %v828_v43, 1  ;;  %v1033_v58 = vrot.slane %v856_v61, 1 }
  0xa8   :  { %v310_v62 = vmul.f32 %v822_v40, %v219_v4  ;;  %v76_v49 = vpack.i.b16 %v75_v55, %v74_v14  ;;  %v1034_v3 = vrot.slane %v830_v44, 1  ;;  %v208_v63 = vunpack.c.l.bf16 %v68_v2 }
  0xa9   :  { %v83_v21 = vshrl.u32 %v1032_v18, 16  ;;  %v90_v31 = vshrl.u32 %v1033_v58, 16  ;;  %v501_v9 = vsel %vm491_vm0, %v414_v57, 0.0  ;;  %v457_v10 = vrot.slane %v449_v17, %v783_v22 }
  0xaa   :  { %v91_v45 = vshrl.u32 %v1034_v3, 16  ;;  %v163_v32 = vshrl.u32 %v55_v8, 16  ;;  %502 = vadd.xlane.f32.xlu0 %v501_v9  ;;  %v450_v0 = vcombine.low %v309_v24, %v310_v62  ;;  %v209_v37 = vunpack.c.l.bf16 %v76_v49 }
  0xab   :  { %v84_v12 = vpack.i.b16 %v83_v21, %v833_v46  ;;  %v299_v56 = vmul.f32 %v799_v33, %v208_v63  ;;  %v170_v50 = vshrl.u32 %v56_v52, 16  ;;  %v171_v53 = vshrl.u32 %v57_v38, 16 }
  0xac   :  { %v92_v54 = vpack.i.b16 %v91_v45, %v90_v31  ;;  %v164_v6 = vpack.i.b16 %v163_v32, %v837_v47  ;;  %v464_v46 = vrot.slane %v450_v0, %v783_v22  ;;  %v300_v8 = vmul.f32 %v818_v39, %v209_v37 }
  0xad   :  { %v210_v23 = vunpack.c.l.bf16 %v84_v12  ;;  %v179_v11 = vshrl.u32 %v59_v20, 16  ;;  %v172_v59 = vpack.i.b16 %v171_v53, %v170_v50  ;;  %v186_v47 = vshrl.u32 %v60_v25, 16 }
  0xae   :  { %v211_v41 = vunpack.c.l.bf16 %v92_v54  ;;  %v187_v52 = vshrl.u32 %v61_v27, 16  ;;  %v465_v29 = vcombine.low %v457_v10, %v464_v46  ;;  %v415_v28 = vcombine.low %v299_v56, %v300_v8 }
  0xaf   :  { %v301_v51 = vmul.f32 %v802_v34, %v210_v23  ;;  %v180_v35 = vpack.i.b16 %v179_v11, %v841_v48  ;;  %v220_v60 = vunpack.c.l.bf16 %v164_v6  ;;  %v221_v30 = vunpack.c.l.bf16 %v172_v59 }
  0xb0   :  { %v302_v38 = vmul.f32 %v822_v40, %v211_v41  ;;  %v188_v13 = vpack.i.b16 %v187_v52, %v186_v47  ;;  %v510_v43 = vsel %vm491_vm0, %v465_v29, 0.0  ;;  %v722_v15 = vmov 0  }
  0xb1   :  { %v222_v36 = vunpack.c.l.bf16 %v180_v35  ;;  %689 = vset.pattern.permute.xlu0 %v722_v15  ;;  %688 = vset.pattern.permute.xlu1 %v722_v15  ;;  %v311_v44 = vmul.f32 %v799_v33, %v220_v60  ;;  %v312_v25 = vmul.f32 %v818_v39, %v221_v30  ;;  %v423_v27 = vrot.slane %v415_v28, %v783_v22 }
  0xb2   :  { %v416_v20 = vcombine.low %v301_v51, %v302_v38  ;;  %511 = vadd.xlane.f32.xlu1 %v510_v43  ;;  %v223_v61 = vunpack.c.l.bf16 %v188_v13  ;;  %v1035_v51 = vlaneseq }
  0xb3   :  { %v313_v16 = vmul.f32 %v802_v34, %v222_v36  ;;  %v466_v19 = vcombine.low %v311_v44, %v312_v25  ;;  %v524_v34 = vpop.permute.xlu0 %523 }
  0xb4   :  { %v430_v48 = vrot.slane %v416_v20, %v783_v22  ;;  %v314_v26 = vmul.f32 %v822_v40, %v223_v61  ;;  %v528_v40 = vpop.permute.xlu1 %527  ;;  %v613_v59 = vand.u32 127, %v1035_v51 }
  0xb5   :  { %v474_v4 = vrot.slane %v466_v19, %v783_v22 }
  0xb6   :  { %v431_v42 = vcombine.low %v423_v27, %v430_v48  ;;  %v467_v2 = vcombine.low %v313_v16, %v314_v26  ;;  %v618_v29 = vadd.s32 4294967288, %v613_v59  ;;  %v625_v38 = vadd.s32 4294967280, %v613_v59 }
  0xb7   :  { %v547_v55 = vpop.permute.xlu0 %546  ;;  %v632_v28 = vadd.s32 4294967272, %v613_v59  ;;  %v616_v60 = vsub.s32 %v613_v59, %v756_v1 }
  0xb8   :  { %v504_v24 = vsel %vm491_vm0, %v431_v42, 0.0  ;;  %v481_v33 = vrot.slane %v467_v2, %v783_v22  ;;  %v543_v57 = vpop.permute.xlu1 %542  ;;  %v621_v13 = vsub.s32 %v618_v29, %v756_v1  ;;  %v628_v43 = vsub.s32 %v625_v38, %v756_v1 }
  0xb9   :  { %505 = vadd.xlane.f32.xlu0 %v504_v24  ;;  %v635_v20 = vsub.s32 %v632_v28, %v756_v1 }
  0xba   :  { %v482_v14 = vcombine.low %v474_v4, %v481_v33 }
  0xbb   :  { %v551_v17 = vpop.permute.xlu0 %550 }
  0xbc   :  { %v513_v39 = vsel %vm491_vm0, %v482_v14, 0.0  ;;  %v532_v18 = vpop.permute.xlu1 %531 }
  0xbd   :  { %514 = vadd.xlane.f32.xlu1 %v513_v39 }
  0xce   :  { %535 = vbcast.lane.b32.xlu1 %v766_v5, 280 }
  0xcf   :  { %554 = vbcast.lane.b32.xlu0 %v771_v7, 280 }
 0x125   :  { %v497_v21 = vpop.xlane.xlu0 %496 }
 0x126   :  { %v565_v58 = vadd.f32 %v528_v40, %v497_v21  ;;  %v494_v31 = vpop.xlane.xlu1 %493 }
 0x127   :  { %v564_v62 = vadd.f32 %v524_v34, %v494_v31 }
 0x128   :  { %v573_v49 = vmul.f32 %v565_v58, %v565_v58 }
 0x129   :  { %v572_v22 = vmul.f32 %v564_v62, %v564_v62  ;;  %v500_v3 = vpop.xlane.xlu0 %499 }
 0x12a   :  { %v566_v45 = vadd.f32 %v532_v18, %v500_v3  ;;  %592 = vperm.xlu0 %689, %v573_v49  }
 0x12b   :  { %589 = vperm.xlu1 %688, %v572_v22  }
 0x12c   :  { %v574_v63 = vmul.f32 %v566_v45, %v566_v45 }
 0x12e   :  { %595 = vperm.xlu0 %689, %v574_v63  }
 0x132   :  { %v509_v7 = vpop.xlane.xlu1 %508 }
 0x133   :  { %v569_v32 = vadd.f32 %v547_v55, %v509_v7 }
 0x135   :  { %v577_v37 = vmul.f32 %v569_v32, %v569_v32 }
 0x137   :  { %v503_v5 = vpop.xlane.xlu0 %502 }
 0x13f   :  { %v512_v9 = vpop.xlane.xlu1 %511 }
 0x140   :  { %v570_v56 = vadd.f32 %v551_v17, %v512_v9 }
 0x142   :  { %v578_v53 = vmul.f32 %v570_v56, %v570_v56 }
 0x146   :  { %v506_v10 = vpop.xlane.xlu0 %505 }
 0x147   :  { %v568_v12 = vadd.f32 %v543_v57, %v506_v10 }
 0x149   :  { %v576_v0 = vmul.f32 %v568_v12, %v568_v12 }
 0x14a   :  { %v515_v54 = vpop.xlane.xlu1 %514  ;;  %v555_v23 = vpop.permute.xlu0 %554 }
 0x14b   :  { %601 = vperm.xlu1 %688, %v576_v0   ;;  %v571_v46 = vadd.f32 %v555_v23, %v515_v54 }
 0x14d   :  { %v579_v8 = vmul.f32 %v571_v46, %v571_v46 }
 0x14e   :  { %v536_v6 = vpop.permute.xlu1 %535 }
 0x14f   :  { %604 = vperm.xlu1 %688, %v577_v37   ;;  %v567_v50 = vadd.f32 %v536_v6, %v503_v5 }
 0x151   :  { %v575_v41 = vmul.f32 %v567_v50, %v567_v50 }
 0x153   :  { %607 = vperm.xlu1 %688, %v578_v53   ;;  %598 = vperm.xlu0 %689, %v575_v41  }
 0x157   :  { %610 = vperm.xlu1 %688, %v579_v8  }
 0x1a9   :  { %v593_v47 = vpop.permute.xlu0 %592 }
 0x1aa   :  { %v590_v11 = vpop.permute.xlu1 %589  ;;  %v622_v15 = vrot.slane %v593_v47, %v621_v13 }
 0x1ab   :  { %v617_v61 = vrot.slane %v590_v11, %v616_v60 }
 0x1ad   :  { %v596_v30 = vpop.permute.xlu0 %595  ;;  %v624_v42 = vsel %vm623_vm1, %v622_v15, %v617_v61 }
 0x1ae   :  { %v629_v27 = vrot.slane %v596_v30, %v628_v43 }
 0x1b0   :  { %v631_v24 = vsel %vm630_vm2, %v629_v27, %v624_v42 }
 0x1ca   :  { %v602_v52 = vpop.permute.xlu1 %601 }
 0x1cb   :  { %v642_v16 = vrot.slane %v602_v52, %v616_v60 }
 0x1ce   :  { %v605_v35 = vpop.permute.xlu1 %604 }
 0x1cf   :  { %v646_v25 = vrot.slane %v605_v35, %v621_v13 }
 0x1d1   :  { %v647_v2 = vsel %vm623_vm1, %v646_v25, %v642_v16 }
 0x1d2   :  { %v608_v36 = vpop.permute.xlu1 %607  ;;  %v599_v44 = vpop.permute.xlu0 %598 }
 0x1d3   :  { %v651_v48 = vrot.slane %v608_v36, %v628_v43  ;;  %v636_v26 = vrot.slane %v599_v44, %v635_v20 }
 0x1d5   :  { %v652_v33 = vsel %vm630_vm2, %v651_v48, %v647_v2  ;;  %v638_v1 = vsel %vm637_vm3, %v636_v26, %v631_v24 }
 0x1d6   :  { %v611_v19 = vpop.permute.xlu1 %610 }
 0x1d7   :  { %v656_v4 = vrot.slane %v611_v19, %v635_v20 }
 0x1d9   :  { %v657_v14 = vsel %vm637_vm3, %v656_v4, %v652_v33 }
 0x1da   :  { %v659_v39 = vsel %vm658_vm4, %v657_v14, %v638_v1 }
 0x1db   :  { %v662_v34 = vsel %vm661_vm5, %v659_v39, 0.0 }
 0x1dc   :  { %663 = vadd.xlane.f32.xlu0 %v662_v34 }
 0x269   :  { %v664_v40 = vpop.xlane.xlu0 %663 }
 0x26a   :  { %690 = vrsqrt.f32 %v664_v40  ;;  %vm667_vm6 = vcmp.eq.f32.partialorder %v664_v40, inf  ;;  %v670_v17 = vand.u32 2147483648, %v664_v40  ;;  %vm669_vm7 = vcmp.eq.f32.partialorder %v664_v40, 0.0 }
 0x274   :  { %v691_v55 = vpop.eup %690 }
 0x275   :  { %v666_v57 = vmul.f32 %v691_v55, %v664_v40 }
 0x277   :  { %v668_v18 = vsel %vm667_vm6, %v664_v40, %v666_v57 }
 0x278   :  { %v671_v21 = vsel %vm669_vm7, %v670_v17, %v668_v18 }
 0x279   :  { %v680_v58 = vadd.f32 -12.0, %v671_v21 }
 0x27b   :  { %674 = vst.msk [vmem:[%s1027_s3] sm:$0x3] %vm673_vm8, %v680_v58 }
 0x27c   :  { %679 = vsyncpa [#allocation3], 1 }

</bundles_post_ra>
